<compile_context>
chip_gen: v5e
topology: v5e:2x2
jax: 0.10.0
libtpu: 0.0.40
codegen_flags: <defaults>
</compile_context>

<pallas_src>
import functools
import math

import jax
import jax.numpy as jnp
from jax import lax
from jax.experimental import pallas as pl
from jax.experimental.pallas import tpu as pltpu

# Full-precision f32 MXU passes in both the kernel and the plain-JAX reference so
# the 1e-5 parity check below is meaningful.
_PREC = jax.lax.Precision.HIGHEST


def _round_up(x, m):
    return (x + m - 1) // m * m


def _vmem_limit_bytes():
    """Per-generation VMEM ceiling: ~100 MiB on 128 MiB chips (v5e/v6e), ~51 MiB
    on 64 MiB-per-core chips (v7x).  Leaves headroom for Mosaic internal scratch;
    BlockSpec inputs are double-buffered inside this budget."""
    try:
        cap = int(pltpu.get_tpu_info().vmem_capacity_bytes)
    except Exception:  # query unavailable -> conservative (v7x-sized) fallback
        cap = 64 * 1024 * 1024
    return min(int(cap * 0.8), 100 * 1024 * 1024)


def _pick_block_b(B, N, F, HP, CP, P, itemsize, vmem_budget):
    """Batch tile TB such that (a) the grid has >= 2 steps whenever B >= 2 (v7x
    megacore sharding + DMA/compute overlap) and (b) the double-buffered working
    set fits the VMEM budget.  Among admissible tiles, the smallest one whose
    flattened matmuls have >= 256 M rows (full MXU tile on v6e/v7x; 128 already
    suffices on v5e), otherwise the largest admissible tile."""
    def vmem_bytes(tb):
        blocks = tb * N * (N + F) * itemsize + tb * N * P * 4        # adj, x, out
        weights = (F * HP + HP * CP) * itemsize + (HP + CP) * 4
        temps = 4 * tb * N * (2 * HP + 2 * CP + N)                   # pre/h/rowsum slack
        return 2 * (blocks + weights) + temps                        # double-buffered

    candidates = [tb for tb in range(1, B + 1)
                  if B % tb == 0
                  and (B < 2 or B // tb >= 2)
                  and vmem_bytes(tb) <= vmem_budget]
    if not candidates:
        # TODO(synk): row/K-tile the adjacency once even TB=1 exceeds VMEM.
        return 1
    for tb in candidates:            # ascending -> maximizes grid steps
        if tb * N >= 256:
            return tb
    return candidates[-1]


def _gcn_kernel(adj_ref, x_ref, w1_ref, b1_ref, w2_ref, b2_ref, out_ref, *, pack):
    f32 = jnp.float32
    tb, n, _ = adj_ref.shape
    f = x_ref.shape[-1]
    hp = w1_ref.shape[1]
    cp = w2_ref.shape[1]
    mm_dtype = adj_ref.dtype

    # A = clip(adj, 0).  The +I self-loop and the symmetric D^{-1/2} scaling are
    # folded into the feature-space math below; only one adjacency copy is live
    # (the f32 view used for the rowsum is transient).
    A = jnp.maximum(adj_ref[...], 0.0)                              # (TB, N, N)
    d = jnp.sum(A.astype(f32), axis=-1, keepdims=True) + 1.0        # rowsum(A + I) >= 1
    d_is = lax.rsqrt(d)                                             # (TB, N, 1) f32

    def norm_matmul(pre):
        # An @ pre with An = D^{-1/2}(A + I)D^{-1/2}
        #           == d_is * (A @ (d_is * pre) + d_is * pre)
        p = d_is * pre                                              # (TB, N, K) f32
        ap = jnp.einsum('bij,bjk->bik', A, p.astype(mm_dtype),
                        preferred_element_type=f32, precision=_PREC)
        return d_is * (ap + p)

    # ---- gc1 ----  x @ W1 is batch-independent: one flattened (TB*N, F) matmul.
    pre1 = jnp.dot(x_ref[...].reshape(tb * n, f), w1_ref[...],
                   preferred_element_type=f32, precision=_PREC).reshape(tb, n, hp)
    h1 = jnp.tanh(norm_matmul(pre1) + b1_ref[...])                  # (TB, N, HP) lane-dense

    # ---- gc2 ----  W2 is zero-padded (and, when pack=True, its useful columns are
    # pre-shifted to lane offset H) in the wrapper, so h1's zero pad columns are
    # inert and h2 lands directly in its packed output lanes -- bit-identical.
    pre2 = jnp.dot(h1.reshape(tb * n, hp).astype(mm_dtype), w2_ref[...],
                   preferred_element_type=f32, precision=_PREC).reshape(tb, n, cp)
    h2 = jnp.tanh(norm_matmul(pre2) + b2_ref[...])                  # (TB, N, CP) lane-dense

    if pack:
        # Lanes >= H of h1 and lanes outside [H, H+C) of h2 are exactly zero
        # (zero pad weights / zero bias -> tanh(0) = 0), so a single VPU add packs
        # [h1 | h2 | 0] into one unmasked, lane-dense 128-wide store.
        out_ref[...] = (h1 + h2).astype(out_ref.dtype)
    else:
        out_ref[...] = jnp.concatenate([h1, h2], axis=-1).astype(out_ref.dtype)


def graph_nn_forward(x, adj, w1, b1, w2, b2, *, block_b=None, use_bf16=False):
    """x: (B, N, F) f32, adj: (B, N, N) f32 -> ((B, N, H), (B, N, C))."""
    B, N, F = x.shape
    H = int(w1.shape[1])
    C = int(w2.shape[1])
    f32 = jnp.float32
    mm_dtype = jnp.bfloat16 if use_bf16 else f32

    # Lane-dense zero padding: H -> HP = round_up(H,128); when H + C <= 128 the gc2
    # weights/bias are placed at lane offset H of a single 128-wide slab so the
    # packed output needs no shuffle at all.
    HP = _round_up(H, 128)
    pack = (H + C) <= 128
    c_off = H if pack else 0
    CP = 128 if pack else _round_up(C, 128)
    P = CP if pack else HP + CP

    w1p = jnp.zeros((F, HP), f32).at[:, :H].set(w1.astype(f32)).astype(mm_dtype)
    b1p = jnp.zeros((1, HP), f32).at[:, :H].set(b1.reshape(1, H).astype(f32))
    w2p = (jnp.zeros((HP, CP), f32)
           .at[:H, c_off:c_off + C].set(w2.astype(f32)).astype(mm_dtype))
    b2p = jnp.zeros((1, CP), f32).at[:, c_off:c_off + C].set(b2.reshape(1, C).astype(f32))

    # Dominant HBM stream is the B*N^2 adjacency; bf16 halves it (use_bf16 path).
    adj_in = adj.astype(mm_dtype)
    x_in = x.astype(mm_dtype)

    vmem_limit = _vmem_limit_bytes()
    itemsize = jnp.dtype(mm_dtype).itemsize
    TB = block_b if block_b is not None else _pick_block_b(
        B, N, F, HP, CP, P, itemsize, vmem_limit)
    assert B % TB == 0, "block_b must divide B"
    grid = (B // TB,)

    grid_spec = pl.GridSpec(
        grid=grid,
        in_specs=[
            pl.BlockSpec((TB, N, N), lambda b: (b, 0, 0)),
            pl.BlockSpec((TB, N, F), lambda b: (b, 0, 0)),
            # Constant index_maps: weight/bias blocks stay resident in VMEM across
            # grid steps (no per-step re-DMA).
            pl.BlockSpec((F, HP), lambda b: (0, 0)),
            pl.BlockSpec((1, HP), lambda b: (0, 0)),
            pl.BlockSpec((HP, CP), lambda b: (0, 0)),
            pl.BlockSpec((1, CP), lambda b: (0, 0)),
        ],
        out_specs=pl.BlockSpec((TB, N, P), lambda b: (b, 0, 0)),
    )

    flops = 2 * B * N * (F * HP + N * HP + HP * CP + N * CP)
    transcendentals = B * N * (HP + CP + 1)                     # tanh + rsqrt
    bytes_accessed = (itemsize * (B * N * (N + F) + F * HP + HP * CP)
                      + 4 * (HP + CP) + 4 * B * N * P)

    out = pl.pallas_call(
        functools.partial(_gcn_kernel, pack=pack),
        out_shape=jax.ShapeDtypeStruct((B, N, P), jnp.float32),
        grid_spec=grid_spec,
        compiler_params=pltpu.CompilerParams(
            dimension_semantics=("parallel",),
            vmem_limit_bytes=vmem_limit,
        ),
        cost_estimate=pl.CostEstimate(
            flops=flops,
            transcendentals=transcendentals,
            bytes_accessed=bytes_accessed,
        ),
    )(adj_in, x_in, w1p, b1p, w2p, b2p)

    off2 = H if pack else HP
    return out[..., :H], out[..., off2:off2 + C]


def init_params(key, nfeat, nhid, nclass):
    """Mirrors GraphConvolution.reset_parameters (uniform(-stdv, stdv))."""
    k1, k2, k3, k4 = jax.random.split(key, 4)
    stdv1 = 1.0 / math.sqrt(nhid)
    stdv2 = 1.0 / math.sqrt(nclass)
    w1 = jax.random.uniform(k1, (nfeat, nhid), jnp.float32, -stdv1, stdv1)
    b1 = jax.random.uniform(k2, (nhid,), jnp.float32, -stdv1, stdv1)
    w2 = jax.random.uniform(k3, (nhid, nclass), jnp.float32, -stdv2, stdv2)
    b2 = jax.random.uniform(k4, (nclass,), jnp.float32, -stdv2, stdv2)
    return w1, b1, w2, b2


def _reference(x, adj, w1, b1, w2, b2):
    """Plain-JAX reference matching the PyTorch forward (explicit An)."""
    N = adj.shape[1]
    A = jnp.maximum(adj, 0.0) + jnp.eye(N, dtype=adj.dtype)[None]
    d = jnp.sum(A, axis=-1) ** -0.5
    An = d[:, :, None] * A * d[:, None, :]
    pre1 = jnp.einsum('bnf,fh->bnh', x, w1, precision=_PREC)
    h1 = jnp.tanh(jnp.einsum('bij,bjh->bih', An, pre1, precision=_PREC)
                  + b1[None, None, :])
    pre2 = jnp.einsum('bnh,hc->bnc', h1, w2, precision=_PREC)
    h2 = jnp.tanh(jnp.einsum('bij,bjc->bic', An, pre2, precision=_PREC)
                  + b2[None, None, :])
    return h1, h2


if __name__ == "__main__":
    B, N, NFEAT, NHID, NCLASS = 2, 16, 32, 32, 8

    key = jax.random.PRNGKey(0)
    kx, kadj, kp = jax.random.split(key, 3)
    x = jax.random.normal(kx, (B, N, NFEAT), jnp.float32)
    adj = jax.random.normal(kadj, (B, N, N), jnp.float32)   # clip handles negatives
    w1, b1, w2, b2 = init_params(kp, NFEAT, NHID, NCLASS)

    out1, out2 = graph_nn_forward(x, adj, w1, b1, w2, b2)
    jax.block_until_ready((out1, out2))

    ref1, ref2 = _reference(x, adj, w1, b1, w2, b2)
    assert out1.shape == (B, N, NHID) and out2.shape == (B, N, NCLASS)
    err1 = float(jnp.max(jnp.abs(out1 - ref1)))
    err2 = float(jnp.max(jnp.abs(out2 - ref2)))
    assert jnp.allclose(out1, ref1, atol=1e-5, rtol=1e-4), err1
    assert jnp.allclose(out2, ref2, atol=1e-5, rtol=1e-4), err2

    print("KERNEL_OK")
</pallas_src>

<mosaic_0001>
module attributes {stable_mosaic.version = 11 : i64} {
  func.func @_gcn_kernel(%arg0: i32, %arg1: memref<1x16x16xf32, #tpu.memory_space<vmem>>, %arg2: memref<1x16x32xf32, #tpu.memory_space<vmem>>, %arg3: memref<32x128xf32, #tpu.memory_space<vmem>>, %arg4: memref<1x128xf32, #tpu.memory_space<vmem>>, %arg5: memref<128x128xf32, #tpu.memory_space<vmem>>, %arg6: memref<1x128xf32, #tpu.memory_space<vmem>>, %arg7: memref<1x16x128xf32, #tpu.memory_space<vmem>>) attributes {dimension_semantics = [#tpu.dimension_semantics<parallel>], iteration_bounds = array<i64: 2>, scalar_prefetch = 0 : i64, scratch_operands = 0 : i64, tpu.core_type = #tpu.core_type<tc>, window_params = [{transform_indices = @transform_0, window_bounds = array<i64: 1, 16, 16>}, {transform_indices = @transform_1, window_bounds = array<i64: 1, 16, 32>}, {pipeline_mode = #tpu.pipeline_mode<synchronous>, transform_indices = @transform_2, window_bounds = array<i64: 32, 128>}, {pipeline_mode = #tpu.pipeline_mode<synchronous>, transform_indices = @transform_3, window_bounds = array<i64: 1, 128>}, {pipeline_mode = #tpu.pipeline_mode<synchronous>, transform_indices = @transform_4, window_bounds = array<i64: 128, 128>}, {pipeline_mode = #tpu.pipeline_mode<synchronous>, transform_indices = @transform_5, window_bounds = array<i64: 1, 128>}, {transform_indices = @transform_6, window_bounds = array<i64: 1, 16, 128>}]} {
    %c0 = arith.constant 0 : index
    %c0_0 = arith.constant 0 : index
    %c0_1 = arith.constant 0 : index
    %0 = vector.load %arg1[%c0, %c0_0, %c0_1] : memref<1x16x16xf32, #tpu.memory_space<vmem>>, vector<1x16x16xf32>
    %cst = arith.constant 0.000000e+00 : f32
    %1 = vector.broadcast %cst : f32 to vector<1x16x16xf32>
    %2 = arith.maximumf %0, %1 : vector<1x16x16xf32>
    %cst_2 = arith.constant dense<0.000000e+00> : vector<1x16xf32>
    %3 = vector.multi_reduction <add>, %2, %cst_2 [2] : vector<1x16x16xf32> to vector<1x16xf32>
    %4 = vector.shape_cast %3 : vector<1x16xf32> to vector<1x16x1xf32>
    %cst_3 = arith.constant 1.000000e+00 : f32
    %5 = vector.broadcast %cst_3 : f32 to vector<1x16x1xf32>
    %6 = arith.addf %4, %5 : vector<1x16x1xf32>
    %7 = math.rsqrt %6 : vector<1x16x1xf32>
    %c0_4 = arith.constant 0 : index
    %c0_5 = arith.constant 0 : index
    %c0_6 = arith.constant 0 : index
    %8 = vector.load %arg2[%c0_4, %c0_5, %c0_6] : memref<1x16x32xf32, #tpu.memory_space<vmem>>, vector<1x16x32xf32>
    %9 = vector.shape_cast %8 : vector<1x16x32xf32> to vector<16x32xf32>
    %c0_7 = arith.constant 0 : index
    %c0_8 = arith.constant 0 : index
    %10 = vector.load %arg3[%c0_7, %c0_8] : memref<32x128xf32, #tpu.memory_space<vmem>>, vector<32x128xf32>
    %cst_9 = arith.constant dense<0.000000e+00> : vector<16x128xf32>
    %11 = tpu.matmul %9, %10, %cst_9 {dimension_numbers = #tpu.dot_dimension_numbers<[1], [0], [0], [1], [0, 0, 1, 1], [], []>, precision = #tpu.contract_precision<fp32>} : vector<16x32xf32>, vector<32x128xf32>, vector<16x128xf32> -> vector<16x128xf32>
    %12 = vector.shape_cast %11 : vector<16x128xf32> to vector<1x16x128xf32>
    %13 = vector.broadcast %7 : vector<1x16x1xf32> to vector<1x16x128xf32>
    %14 = arith.mulf %13, %12 : vector<1x16x128xf32>
    "tpu.trace_start"() <{level = 10 : i32, message = "bij,bjk->bik"}> : () -> ()
    %cst_10 = arith.constant dense<0.000000e+00> : vector<1x16x128xf32>
    %15 = tpu.matmul %2, %14, %cst_10 {dimension_numbers = #tpu.dot_dimension_numbers<[2], [1], [1], [2], [0, 0, 0, 1, 1, 2], [0], [0]>, precision = #tpu.contract_precision<fp32>} : vector<1x16x16xf32>, vector<1x16x128xf32>, vector<1x16x128xf32> -> vector<1x16x128xf32>
    "tpu.trace_stop"() : () -> ()
    %16 = arith.addf %15, %14 : vector<1x16x128xf32>
    %17 = vector.broadcast %7 : vector<1x16x1xf32> to vector<1x16x128xf32>
    %18 = arith.mulf %17, %16 : vector<1x16x128xf32>
    %c0_11 = arith.constant 0 : index
    %c0_12 = arith.constant 0 : index
    %19 = vector.load %arg4[%c0_11, %c0_12] : memref<1x128xf32, #tpu.memory_space<vmem>>, vector<1x128xf32>
    %20 = vector.shape_cast %19 : vector<1x128xf32> to vector<1x1x128xf32>
    %21 = vector.broadcast %20 : vector<1x1x128xf32> to vector<1x16x128xf32>
    %22 = arith.addf %18, %21 : vector<1x16x128xf32>
    %23 = math.tanh %22 : vector<1x16x128xf32>
    %24 = vector.shape_cast %23 : vector<1x16x128xf32> to vector<16x128xf32>
    %c0_13 = arith.constant 0 : index
    %c0_14 = arith.constant 0 : index
    %25 = vector.load %arg5[%c0_13, %c0_14] : memref<128x128xf32, #tpu.memory_space<vmem>>, vector<128x128xf32>
    %cst_15 = arith.constant dense<0.000000e+00> : vector<16x128xf32>
    %26 = tpu.matmul %24, %25, %cst_15 {dimension_numbers = #tpu.dot_dimension_numbers<[1], [0], [0], [1], [0, 0, 1, 1], [], []>, precision = #tpu.contract_precision<fp32>} : vector<16x128xf32>, vector<128x128xf32>, vector<16x128xf32> -> vector<16x128xf32>
    %27 = vector.shape_cast %26 : vector<16x128xf32> to vector<1x16x128xf32>
    %28 = vector.broadcast %7 : vector<1x16x1xf32> to vector<1x16x128xf32>
    %29 = arith.mulf %28, %27 : vector<1x16x128xf32>
    "tpu.trace_start"() <{level = 10 : i32, message = "bij,bjk->bik"}> : () -> ()
    %cst_16 = arith.constant dense<0.000000e+00> : vector<1x16x128xf32>
    %30 = tpu.matmul %2, %29, %cst_16 {dimension_numbers = #tpu.dot_dimension_numbers<[2], [1], [1], [2], [0, 0, 0, 1, 1, 2], [0], [0]>, precision = #tpu.contract_precision<fp32>} : vector<1x16x16xf32>, vector<1x16x128xf32>, vector<1x16x128xf32> -> vector<1x16x128xf32>
    "tpu.trace_stop"() : () -> ()
    %31 = arith.addf %30, %29 : vector<1x16x128xf32>
    %32 = vector.broadcast %7 : vector<1x16x1xf32> to vector<1x16x128xf32>
    %33 = arith.mulf %32, %31 : vector<1x16x128xf32>
    %c0_17 = arith.constant 0 : index
    %c0_18 = arith.constant 0 : index
    %34 = vector.load %arg6[%c0_17, %c0_18] : memref<1x128xf32, #tpu.memory_space<vmem>>, vector<1x128xf32>
    %35 = vector.shape_cast %34 : vector<1x128xf32> to vector<1x1x128xf32>
    %36 = vector.broadcast %35 : vector<1x1x128xf32> to vector<1x16x128xf32>
    %37 = arith.addf %33, %36 : vector<1x16x128xf32>
    %38 = math.tanh %37 : vector<1x16x128xf32>
    %39 = arith.addf %23, %38 : vector<1x16x128xf32>
    %c0_19 = arith.constant 0 : index
    %c0_20 = arith.constant 0 : index
    %c0_21 = arith.constant 0 : index
    %40 = vector.load %arg7[%c0_19, %c0_20, %c0_21] : memref<1x16x128xf32, #tpu.memory_space<vmem>>, vector<1x16x128xf32>
    tpu.vector_store %arg7[%c0_19, %c0_20, %c0_21], %39 {strides = array<i32>} : memref<1x16x128xf32, #tpu.memory_space<vmem>>, vector<1x16x128xf32>,
    return
  }
  func.func @transform_0(%arg0: i32) -> (i32, i32, i32) {
    %c0_i32 = arith.constant 0 : i32
    %c0_i32_0 = arith.constant 0 : i32
    %c0_i32_1 = arith.constant 0 : i32
    return %arg0, %c0_i32, %c0_i32_0 : i32, i32, i32
  }
  func.func @transform_1(%arg0: i32) -> (i32, i32, i32) {
    %c0_i32 = arith.constant 0 : i32
    %c0_i32_0 = arith.constant 0 : i32
    %c0_i32_1 = arith.constant 0 : i32
    return %arg0, %c0_i32, %c0_i32_0 : i32, i32, i32
  }
  func.func @transform_2(%arg0: i32) -> (i32, i32) {
    %c0_i32 = arith.constant 0 : i32
    %c0_i32_0 = arith.constant 0 : i32
    %c0_i32_1 = arith.constant 0 : i32
    return %c0_i32, %c0_i32_0 : i32, i32
  }
  func.func @transform_3(%arg0: i32) -> (i32, i32) {
    %c0_i32 = arith.constant 0 : i32
    %c0_i32_0 = arith.constant 0 : i32
    %c0_i32_1 = arith.constant 0 : i32
    return %c0_i32, %c0_i32_0 : i32, i32
  }
  func.func @transform_4(%arg0: i32) -> (i32, i32) {
    %c0_i32 = arith.constant 0 : i32
    %c0_i32_0 = arith.constant 0 : i32
    %c0_i32_1 = arith.constant 0 : i32
    return %c0_i32, %c0_i32_0 : i32, i32
  }
  func.func @transform_5(%arg0: i32) -> (i32, i32) {
    %c0_i32 = arith.constant 0 : i32
    %c0_i32_0 = arith.constant 0 : i32
    %c0_i32_1 = arith.constant 0 : i32
    return %c0_i32, %c0_i32_0 : i32, i32
  }
  func.func @transform_6(%arg0: i32) -> (i32, i32, i32) {
    %c0_i32 = arith.constant 0 : i32
    %c0_i32_0 = arith.constant 0 : i32
    %c0_i32_1 = arith.constant 0 : i32
    return %arg0, %c0_i32, %c0_i32_0 : i32, i32, i32
  }
}

</mosaic_0001>

<bundles_post_ra>
// kernel: tpu_custom_call.1
= control target key start
LH: loop header
LB: loop body
LE: loop exit
PB: predicated region body
PF: predicated region fallthrough
CT: control target
= control target key end

     0   :  { %s2452_s0 = inlined_call_operand.hbm [shape: f32[2,16,16], index: 0, kind: input, shape index: {}]   ;;  %s2453_s1 = inlined_call_operand.hbm [shape: f32[2,16,32], index: 1, kind: input, shape index: {}]   ;;  %s2454_s2 = inlined_call_operand.hbm [shape: f32[32,128], index: 2, kind: input, shape index: {}]   ;;  %s2455_s3 = inlined_call_operand.vmem [shape: f32[1,128], index: 3, kind: input, shape index: {}]   ;;  %s2456_s4 = inlined_call_operand.hbm [shape: f32[128,128], index: 4, kind: input, shape index: {}]   ;;  %s2457_s5 = inlined_call_operand.vmem [shape: f32[1,128], index: 5, kind: input, shape index: {}]   ;;  %s2458_s6 = inlined_call_operand.hbm [shape: f32[2,16,128], index: 6, kind: output, shape index: {}]  }
   0x1   :  { %2467 = sst [smem:[#allocation18_spill]] %s2452_s0 }
   0x2   :  { %2468 = sst [smem:[#allocation19_spill]] %s2454_s2 }
   0x3   :  { %2469 = sst [smem:[#allocation20_spill]] %s2456_s4 }
   0x4   :  { %11 = vsyncpa [#allocation3], 0 }
   0x5   :  { %13 = vsyncpa [#allocation3 + $0x1], 0 }
   0x6   :  { %14 = vsyncpa [#allocation6], 0 }
   0x7   :  { %16 = vsyncpa [#allocation6 + $0x1], 0 }
   0x8   :  { %17 = vsyncpa [#allocation9], 0 }
   0x9   :  { %18 = vsyncpa [#allocation4], 0 }
   0xa   :  { %20 = vsyncpa [#allocation4 + $0x1], 0  ;;  %s1906_s21 = smov 0   ;;  %s1908_s22 = smov 0  }
   0xb   :  { %s1910_s23 = smov 0   ;;  %s1912_s24 = smov 0  }
   0xc LB: > { %2470 = sst [smem:[#allocation16_spill]] %s1859_s23  ;;  %s1927_s25 = sadd.s32 4294967295, %s1863_s24   ;;  %s1863_s24 = sphi %s1912_s24, %s2490_s24   ;;  %s1859_s23 = sphi %s1910_s23, %s2487_s23   ;;  %s1855_s22 = sphi %s1908_s22, %s2489_s22   ;;  %s1851_s21 = sphi %s1906_s21, %s2488_s21  }
   0xd   : > { %s1542_s26 = sadd.s32 4294967294, %s1863_s24   ;;  %p46_p0 = scmp.ne.s32.totalorder %s1855_s22, %s1851_s21 }
   0xe   : > { %p47_p1 = scmp.eq.s32.totalorder %s1927_s25, 0  ;;  %p180_p2 = scmp.eq.s32.totalorder %s1927_s25, 1 }
   0xf   : > { %p186_p3 = scmp.eq.s32.totalorder %s1542_s26, 1  ;;  %p1543_p5 = scmp.ge.s32.totalorder %s1863_s24, 1 }
  0x10   : > { %p1936_p4 = por %p47_p1, %p46_p0  ;;  %p193_p7 = scmp.lt.s32.totalorder %s1863_s24, 3 }
  0x11   : > { %p1941_p6 = por %p186_p3, %p46_p0  ;;  %s2473_s2 = sld [smem:[#allocation19_spill]] }
  0x12   : > { %p1949_p8 = pnand %p1543_p5, %p193_p7  ;;  %s1865_s9 = smov [#allocation7]  }
  0x13   : > { %s206_s10 = sshll.u32 %s1865_s9, 4  ;;  %s2475_s4 = sld [smem:[#allocation20_spill]]  ;;  %s207_s10 = int_to_ptr.vmem [resolvable:$true] %s206_s10 }
  0x14   : > { %p1589_p9 = pneg %p1949_p8  ;;  %s2459_s14 = smov 128  }
  0x15   : > { %s2461_s15 = smov 8   ;;  %s1868_s16 = smov [#allocation8]  }
  0x16   : > { %p1590_p10 = pnand %p1589_p9, %p47_p1  ;;  %s223_s17 = sshll.u32 %s1868_s16, 4  ;;  %s224_s17 = int_to_ptr.vmem [resolvable:$true] %s223_s17 }
  0x17   : > { %s204_s7 = sshll.u32 %s2473_s2, 4  ;;  %s1968_s18 = sadd.s32 1, %s1863_s24   ;;  %s205_s7 = int_to_ptr.hbm [resolvable:$true] %s204_s7 }
  0x18   : > { %1592 = dma.hbm_to_vmem [thread:$0]  (!%p1590_p10), %s205_s7, 512, %s207_s10, [#allocation6], %s2459_s14, %s2459_s14, %s2461_s15  }
  0x19   : > { %s221_s13 = sshll.u32 %s2475_s4, 4  ;;  %s33_s19 = sadd.s32 1, %s1859_s23  ;;  %s222_s13 = int_to_ptr.hbm [resolvable:$true] %s221_s13 }
  0x1a   : > { %1595 = dma.hbm_to_vmem [thread:$0]  (!%p1590_p10), %s222_s13, 2048, %s224_s17, [#allocation9], %s2459_s14, %s2459_s14, %s2461_s15  }
  0x1b   : > { %s30_s20 = ssub.s32 %s1863_s24, %s1968_s18  ;;  %p40_p12 = scmp.ne.s32.totalorder %s1859_s23, %s1855_s22 }
  0x1c   : > { %p31_p13 = scmp.eq.s32.totalorder %s30_s20, 0  ;;  %p41_p0 = scmp.eq.s32.totalorder %s1863_s24, 0 }
  0x1d   : > { %p1978_p3 = por %p180_p2, %p40_p12  ;;  %p1609_p5 = scmp.lt.s32.totalorder %s1863_s24, 2 }
  0x1e   : > { %s1984_s29 = scalar_select %p31_p13, %s1859_s23, %s33_s19  }
  0x1f   : > { %p42_p7 = por %p41_p0, %p40_p12  ;;  %s240_s30 = sand.u32 1, %s1859_s23  }
  0x20   : > { %2477 = sst [smem:[#allocation17_spill]] %s1984_s29  ;;  %s1987_s7 = sshll.u32 %s240_s30, 4 }
  0x21   : > { %s1564_s9 = sshll.u32 %s1863_s24, 4  ;;  %s2478_s0 = sld [smem:[#allocation18_spill]] }
  0x22   : > { %s244_s13 = scalar_lea.vmem [#allocation2], %s1987_s7  ;;  %p1994_p2 = pnand %p1609_p5, %p42_p7 }
  0x23   : > { %s252_s16 = sshll.u32 %s244_s13, 4  ;;  %s271_s15 = scalar_lea.hbm %s2453_s1, %s1564_s9  ;;  %s253_s16 = int_to_ptr.vmem [resolvable:$true] %s252_s16 }
  0x24   : > { %s272_s2 = sshll.u32 %s271_s15, 4  ;;  %s241_s4 = scalar_lea.sflag [#allocation3], %s240_s30  ;;  %s273_s2 = int_to_ptr.hbm [resolvable:$true] %s272_s2 }
  0x25   : > { %p1729_p10 = pneg %p1994_p2 }
  0x27   : > { %s249_s12 = scalar_lea.hbm %s2478_s0, %s1564_s9  ;;  %s1732_s13 = scalar_lea.hbm %s2478_s0, 32 }
  0x28   : > { %s250_s17 = sshll.u32 %s249_s12, 4  ;;  %s251_s17 = int_to_ptr.hbm [resolvable:$true] %s250_s17 }
  0x29   : > { %s1725_s29 = sshra.s32 %s251_s17, 4  ;;  %s1726_s29 = int_to_ptr.hbm [resolvable:$true] %s1725_s29 }
  0x2a   : > { %s1727_s10 = scalar_lea.hbm %s1726_s29, 16  ;;  %p1733_p0 = scmp.lt.s32.totalorder %s1726_s29, %s2478_s0 }
  0x2b   : > { %p1728_p9 = scmp.ne.s32.totalorder %s1726_s29, %s1727_s10  ;;  %p1734_p5 = scmp.lt.s32.totalorder %s1732_s13, %s1727_s10 }
  0x2d   : > { %p1730_p12 = pnand %p1729_p10, %p1728_p9  ;;  %p1735_p7 = por %p1734_p5, %p1733_p0 }
  0x2f   : > { %p1731_p13 = pneg %p1730_p12 }
  0x31   : > { %p1736_p11 = pnand %p1735_p7, %p1731_p13 }
  0x33   : > { %1739 = shalt.err (!%p1736_p11)
}
  0x34   : > { %s2480_s15 = smov 8   ;;  %s2481_s30 = smov 128  }
  0x35   : > { %1599 = dma.hbm_to_vmem [thread:$0]  (!%p1994_p2), %s251_s17, 256, %s253_s16, %s241_s4, %s2481_s30, %s2481_s30, %s2480_s15  }
  0x36   : > { %s266_s9 = scalar_lea.vmem [#allocation5], %s1987_s7  ;;  %s262_s12 = sand.u32 1, %s1863_s24  }
  0x37   : > { %s274_s11 = sshll.u32 %s266_s9, 4  ;;  %s263_s14 = scalar_lea.sflag [#allocation6], %s262_s12  ;;  %s275_s11 = int_to_ptr.vmem [resolvable:$true] %s274_s11 }
  0x38   : > { %s1755_s29 = sshra.s32 %s273_s2, 4  ;;  %s1762_s0 = scalar_lea.hbm %s2453_s1, 32  ;;  %s1756_s29 = int_to_ptr.hbm [resolvable:$true] %s1755_s29 }
  0x39   : > { %s1757_s10 = scalar_lea.hbm %s1756_s29, 16  ;;  %p1763_p13 = scmp.lt.s32.totalorder %s1756_s29, %s2453_s1 }
  0x3a   : > { %p1758_p9 = scmp.ne.s32.totalorder %s1756_s29, %s1757_s10  ;;  %p1764_p0 = scmp.lt.s32.totalorder %s1762_s0, %s1757_s10 }
  0x3c   : > { %p1760_p11 = pnand %p1758_p9, %p1729_p10  ;;  %p1765_p5 = por %p1764_p0, %p1763_p13 }
  0x3e   : > { %p1761_p12 = pneg %p1760_p11 }
  0x40   : > { %p1766_p7 = pnand %p1765_p5, %p1761_p12 }
  0x42   : > { %1769 = shalt.err (!%p1766_p7)
}
  0x43   : > { %1602 = dma.hbm_to_vmem [thread:$0]  (!%p1994_p2), %s273_s2, 256, %s275_s11, %s263_s14, %s2481_s30, %s2481_s30, %s2480_s15  }
  0x44   : > { %286 = sbr.rel (%p1949_p8) target bundleno = 787 (0x313), region = 44  ;;  %s2036_s7 = sand.u32 (!%p1949_p8), 1, %s1855_s22  }
  0x45   : > { %s2039_s23 = sshll.u32 (!%p1949_p8), %s2036_s7, 4  ;;  %s289_s0 = scalar_lea.sflag (!%p1949_p8), [#allocation3], %s2036_s7 }
  0x46   : > { %s292_s16 = scalar_lea.vmem (!%p1949_p8), [#allocation2], %s2039_s23 }
  0x49   : > { %1830 = dma.done.wait (%p1936_p4), %s289_s0, 256  }
  0x4a   : > { %1832 = vsyncadd (%p1936_p4), %s289_s0, 4294967040  ;;  %s298_s2 = sand.u32 1, %s1927_s25   ;;  %s302_s17 = scalar_lea.vmem [#allocation5], %s2039_s23 }
  0x4b   : > { %s299_s8 = scalar_lea.sflag [#allocation6], %s298_s2 }
  0x4c   : > { %1834 = dma.done.wait (%p1936_p4), %s299_s8, 256  }
  0x4d   : > { %1836 = vsyncadd (%p1936_p4), %s299_s8, 4294967040 }
  0x4e   : > { %1838 = dma.done.wait (%p47_p1), [#allocation6], 512  }
  0x4f   : > { %1840 = vsyncadd (%p47_p1), [#allocation6], 4294966784 }
  0x50   : > { %1842 = dma.done.wait (%p47_p1), [#allocation9], 2048  }
  0x51   : > { %1844 = vsyncadd (%p47_p1), [#allocation9], 4294965248  ;;  %vm386_vm0 = vcmask 261120   ;;  %v385_v0 = vld [vmem:[#allocation7 + $0x18] sm:$0xff]  ;;  %v384_v1 = vld [vmem:[#allocation7 + $0x10] sm:$0xff]  ;;  %vm351_vm1 = vcmask 130048  }
  0x52   : > { %v383_v2 = vld [vmem:[#allocation7 + $0x8] sm:$0xff]  ;;  %v2061_v3 = vand.u32 4294901760, %v385_v0  ;;  %v2063_v4 = vand.u32 4294901760, %v384_v1  ;;  %v382_v6 = vld [vmem:[#allocation7] sm:$0xff]  ;;  %s1566_s9 = sshll.u32 %s1927_s25, 4  ;;  %s346_s29 = scalar_lea.vmem [#allocation10], %s2039_s23 }
  0x53   : > { %v2065_v5 = vand.u32 4294901760, %v383_v2  ;;  %v381_v7 = vld [vmem:[%s302_s17 + $0x8] sm:$0xff]  ;;  %v2069_v9 = vand.u32 4294901760, %v382_v6  ;;  %v380_v12 = vld [vmem:[%s302_s17] sm:$0xff]  ;;  %s1423_s14 = scalar_lea.hbm %s2458_s6, %s1566_s9  ;;  %s1424_s10 = sshll.u32 %s346_s29, 4  ;;  %s1425_s10 = int_to_ptr.vmem [resolvable:$true] %s1424_s10 }
  0x54   : > { %v348_v8 = vld [vmem:[%s292_s16 + $0x8] sm:$0xff]  ;;  %v391_v10 = vsel %vm386_vm0, %v381_v7, 0  ;;  %1567 = vmatpush.msra.mxu2 %v2061_v3  ;;  %v443_v13 = vsub.f32 %v385_v0, %v2061_v3  ;;  %v449_v15 = vsub.f32 %v384_v1, %v2063_v4  ;;  %406 = vmatpush.msra.mxu0 %v2061_v3  ;;  %v388_v20 = vsel %vm386_vm0, %v380_v12, 0  ;;  %v347_v25 = vld [vmem:[%s292_s16] sm:$0xff]  ;;  %s1426_s13 = sshll.u32 %s1423_s14, 4  ;;  %s1412_s25 = scalar_lea.sflag [#allocation4], %s2036_s7  ;;  %s1427_s13 = int_to_ptr.hbm [resolvable:$true] %s1426_s13 }
  0x55   : > { %v350_v11 = vmax.f32 %v348_v8, 0.0  ;;  %v2074_v14 = vand.u32 4294901760, %v391_v10  ;;  %v455_v16 = vsub.f32 %v383_v2, %v2065_v5  ;;  %v461_v19 = vsub.f32 %v382_v6, %v2069_v9  ;;  %s1799_s19 = sshra.s32 %s1427_s13, 4  ;;  %s1805_s23 = scalar_lea.hbm %s2458_s6, 32  ;;  %s1800_s19 = int_to_ptr.hbm [resolvable:$true] %s1799_s19 }
  0x56   : > { %1568 = vmatpush.msra.mxu2 %v2063_v4  ;;  %v444_v21 = vand.u32 4294901760, %v443_v13  ;;  %v450_v23 = vand.u32 4294901760, %v449_v15  ;;  %v413_v27 = vand.u32 4294901760, %v388_v20  ;;  %408 = vmatpush.msra.mxu0 %v2063_v4  ;;  %v349_v33 = vmax.f32 %v347_v25, 0.0  ;;  %s1801_s4 = scalar_lea.hbm %s1800_s19, 16  ;;  %p1806_p2 = scmp.lt.s32.totalorder %s1800_s19, %s2458_s6 }
  0x57   : > { %v355_v17 = vsel %vm351_vm1, %v350_v11, 0.0  ;;  %v2081_v18 = vsel %vm351_vm1, %v350_v11, 0  ;;  %v2087_v22 = vsub.f32 %v391_v10, %v2074_v14  ;;  %v456_v24 = vand.u32 4294901760, %v455_v16  ;;  %p1802_p1 = scmp.ne.s32.totalorder %s1800_s19, %s1801_s4  ;;  %p1807_p10 = scmp.lt.s32.totalorder %s1805_s23, %s1801_s4 }
  0x58   : > { %356 = vadd.xlane.f32.xlu0 %v355_v17  ;;  %v462_v26 = vand.u32 4294901760, %v461_v19  ;;  %1569 = vmatpush.msra.mxu2 %v2065_v5  ;;  %v445_v28 = vsub.f32 %v443_v13, %v444_v21  ;;  %v451_v30 = vsub.f32 %v449_v15, %v450_v23  ;;  %v414_v32 = vsub.f32 %v388_v20, %v413_v27 }
  0x59   : > { %v423_v29 = vand.u32 4294901760, %v2087_v22  ;;  %v457_v31 = vsub.f32 %v455_v16, %v456_v24  ;;  %410 = vmatpush.msra.mxu0 %v2065_v5  ;;  %v2098_v38 = vsel %vm351_vm1, %v349_v33, 0  ;;  %v352_v42 = vsel %vm351_vm1, %v349_v33, 0.0  ;;  %p1803_p4 = pnand %p1802_p1, %p1978_p3  ;;  %p1808_p9 = por %p1807_p10, %p1806_p2 }
  0x5a   : > { %1570 = vmatpush.msra.mxu2 %v2069_v9  ;;  %v446_v34 = vand.u32 4294901760, %v445_v28  ;;  %v452_v36 = vand.u32 4294901760, %v451_v30  ;;  %v463_v37 = vsub.f32 %v461_v19, %v462_v26  ;;  %v415_v39 = vand.u32 4294901760, %v414_v32 }
  0x5b   : > { %v424_v35 = vsub.f32 %v2087_v22, %v423_v29  ;;  %412 = vmatpush.msra.mxu0 %v2069_v9  ;;  %v458_v41 = vand.u32 4294901760, %v457_v31  ;;  %p1804_p8 = pneg %p1803_p4 }
  0x5c   : > { %489 = vmatpush.msrb.mxu2 %v443_v13  ;;  %1571 = vmatpush.msra.mxu3 %v446_v34  ;;  %v416_v43 = vsub.f32 %v414_v32, %v415_v39  ;;  %v464_v44 = vand.u32 4294901760, %v463_v37 }
  0x5d   : > { %v425_v40 = vand.u32 4294901760, %v424_v35  ;;  %447 = vmatpush.msra.mxu1 %v446_v34  ;;  %558 = vmatpush.msrb.mxu0 %v444_v21  ;;  %v2127_v21 = vand.u32 4294901760, %v2081_v18  ;;  %p1809_p11 = pnand %p1808_p9, %p1804_p8 }
  0x5e   : > { %492 = vmatpush.msrb.mxu2 %v449_v15  ;;  %1572 = vmatpush.msra.mxu3 %v452_v36  ;;  %v417_v45 = vand.u32 4294901760, %v416_v43 }
  0x5f   : > { %426 = vmatmul.f32.vlgmr.msra.gmra.mxu2 %v425_v40  ;;  %453 = vmatpush.msra.mxu1 %v452_v36  ;;  %v2135_v28 = vsub.f32 %v2081_v18, %v2127_v21  ;;  %v832_v40 = vld [vmem:[#allocation8 + $0x78] sm:$0xff] }
  0x60   : > { %495 = vmatpush.msrb.mxu2 %v455_v16  ;;  %1573 = vmatpush.msra.mxu3 %v458_v41 }
  0x61   : > { %353 = vadd.xlane.f32.xlu0 %v352_v42  ;;  %459 = vmatpush.msra.mxu1 %v458_v41  ;;  %v2149_v36 = vand.u32 4294901760, %v2135_v28  ;;  %v831_v41 = vld [vmem:[#allocation8 + $0x70] sm:$0xff]  ;;  %v830_v42 = vld [vmem:[#allocation8 + $0x68] sm:$0xff] }
  0x62   : > { %498 = vmatpush.msrb.mxu2 %v461_v19  ;;  %1574 = vmatpush.msra.mxu3 %v464_v44 }
  0x63   : > { %418 = vmatmul.f32.vlgmr.msra.gmra.mxu0 %v417_v45  ;;  %471 = vmatmul.f32.vlgmr.msra.gmra.mxu3 %v2074_v14  ;;  %v2157_v45 = vand.u32 4294901760, %v831_v41 }
  0x64   : > { %465 = vmatpush.msra.mxu1 %v464_v44  ;;  %523 = vmatpush.msrb.mxu3 %v2061_v3  ;;  %v2155_v44 = vand.u32 4294901760, %v832_v40 }
  0x65   : > { %467 = vmatmul.f32.vlgmr.msra.gmra.mxu1 %v413_v27  ;;  %562 = vmatpush.msrb.mxu0 %v450_v23 }
  0x66   : > { %593 = vmatpush.msrb.mxu1 %v2061_v3  ;;  %525 = vmatpush.msrb.mxu3 %v2063_v4 }
  0x67   : > { %501 = vmatmul.f32.vlgmr.msrb.gmra.mxu2 %v414_v32  ;;  %566 = vmatpush.msrb.mxu0 %v456_v24 }
  0x68   : > { %595 = vmatpush.msrb.mxu1 %v2063_v4  ;;  %527 = vmatpush.msrb.mxu3 %v2065_v5 }
  0x69   : > { %570 = vmatpush.msrb.mxu0 %v462_v26 }
  0x6a   : > { %597 = vmatpush.msrb.mxu1 %v2065_v5  ;;  %529 = vmatpush.msrb.mxu3 %v2069_v9  ;;  %v2115_v5 = vand.u32 4294901760, %v2098_v38 }
  0x6b   : > { %572 = vmatmul.f32.vlgmr.msrb.gmra.mxu0 %v413_v27  ;;  %533 = vmatmul.f32.vlgmr.msrb.gmra.mxu3 %v415_v39  ;;  %v646_v39 = vsub.f32 %v2135_v28, %v2149_v36 }
  0x6c   : > { %599 = vmatpush.msrb.mxu1 %v2069_v9  ;;  %v2119_v12 = vsub.f32 %v2098_v38, %v2115_v5 }
  0x6d   : > { %601 = vmatmul.f32.vlgmr.msrb.gmra.mxu1 %v413_v27 }
  0x6e   : > { %v2131_v25 = vand.u32 4294901760, %v2119_v12 }
  0x6f   : > { %506 = vmatmul.f32.gmra.mxu2 %v2087_v22 }
  0x70   : > { %v638_v30 = vsub.f32 %v2119_v12, %v2131_v25 }
  0x72   : > { %v2146_v34 = vand.u32 4294901760, %v638_v30 }
  0x73   : > { %576 = vmatmul.f32.gmra.mxu0 %v2074_v14  ;;  %539 = vmatmul.f32.gmra.mxu3 %v423_v29 }
  0x75   : > { %605 = vmatmul.f32.gmra.mxu1 %v2074_v14 }
  0xcb   : > { %v357_v46 = vpop.xlane.xlu0 %356 }
  0xcc   : > { %v359_v49 = vadd.f32 1.0, %v357_v46  ;;  %v2159_v46 = vand.u32 4294901760, %v830_v42 }
  0xce   : > { %vm376_vm5 = vweird.f32 %v359_v49 }
  0xd4   : > { %v354_v47 = vpop.xlane.xlu0 %353 }
  0xd5   : > { %v358_v48 = vadd.f32 1.0, %v354_v47 }
  0xd7   : > { %1653 = vrsqrt.f32 %v358_v48  ;;  %vm366_vm2 = vweird.f32 %v358_v48 }
  0xd8   : > { %1655 = vrsqrt.f32 %v359_v49 }
  0xdd   : > { %v1654_v50 = vpop.eup %1653 }
  0xde   : > { %v361_v51 = vmul.f32 %v1654_v50, %v358_v48  ;;  %v1656_v55 = vpop.eup %1655  ;;  %vm367_vm3 = vweird.f32 %v1654_v50  ;;  %v2164_v48 = vsub.f32 %v832_v40, %v2155_v44 }
  0xdf   : > { %v371_v58 = vmul.f32 %v1656_v55, %v359_v49  ;;  %vm368_vm4 = vmor %vm366_vm2, %vm367_vm3  ;;  %vm377_vm6 = vweird.f32 %v1656_v55  ;;  %v2167_v49 = vsub.f32 %v831_v41, %v2157_v45  ;;  %v822_v41 = vld [vmem:[#allocation8 + $0x28] sm:$0xff] }
  0xe0   : > { %v419_v53 = vpop.f32.mrf.mxu0  ;;  %v362_v54 = vmul.f32 %v1654_v50, %v361_v51  ;;  %vm378_vm7 = vmor %vm376_vm5, %vm377_vm6  ;;  %v2173_v51 = vand.u32 4294901760, %v646_v39 }
  0xe1   : > { %v372_v62 = vmul.f32 %v1656_v55, %v371_v58 }
  0xe2   : > { %v427_v52 = vpop.f32.mrf.mxu2  ;;  %v468_v57 = vpop.f32.mrf.mxu1  ;;  %v363_v59 = vmul.f32 0.5, %v362_v54  ;;  %v890_v54 = vand.u32 4294901760, %v2167_v49 }
  0xe3   : > { %v469_v60 = vadd.f32 %v468_v57, %v419_v53  ;;  %v373_v6 = vmul.f32 0.5, %v372_v62  ;;  %v884_v53 = vand.u32 4294901760, %v2164_v48  ;;  %v829_v62 = vld [vmem:[#allocation8 + $0x60] sm:$0xff] }
  0xe4   : > { %v364_v63 = vsub.f32 1.5, %v363_v59  ;;  %v891_v57 = vsub.f32 %v2167_v49, %v890_v54 }
  0xe5   : > { %v374_v13 = vsub.f32 1.5, %v373_v6 }
  0xe6   : > { %v472_v56 = vpop.f32.mrf.mxu3  ;;  %v365_v7 = vmul.f32 %v1654_v50, %v364_v63  ;;  %v2204_v63 = vand.u32 4294901760, %v829_v62 }
  0xe7   : > { %v473_v10 = vadd.f32 %v472_v56, %v427_v52  ;;  %v375_v22 = vmul.f32 %v1656_v55, %v374_v13  ;;  %v885_v56 = vsub.f32 %v2164_v48, %v884_v53 }
  0xe8   : > { %v573_v0 = vpop.f32.mrf.mxu0  ;;  %v2121_v14 = vsel %vm368_vm4, %v1654_v50, %v365_v7  ;;  %v2170_v50 = vsub.f32 %v830_v42, %v2159_v46 }
  0xe9   : > { %v2137_v29 = vsel %vm378_vm7, %v1656_v55, %v375_v22  ;;  %v886_v59 = vand.u32 4294901760, %v885_v56 }
  0xea   : > { %v502_v61 = vpop.f32.mrf.mxu2  ;;  %v602_v3 = vpop.f32.mrf.mxu1  ;;  %v896_v55 = vand.u32 4294901760, %v2170_v50 }
  0xeb   : > { %v503_v1 = vadd.f32 %v502_v61, %v469_v60  ;;  %v892_v60 = vand.u32 4294901760, %v891_v57  ;;  %v821_v57 = vld [vmem:[#allocation8 + $0x20] sm:$0xff] }
  0xec   : > { %v897_v58 = vsub.f32 %v2170_v50, %v896_v55 }
  0xee   : > { %v534_v2 = vpop.f32.mrf.mxu3  ;;  %v898_v61 = vand.u32 4294901760, %v897_v58 }
  0xef   : > { %v535_v4 = vadd.f32 %v534_v2, %v503_v1  ;;  %v2207_v1 = vsub.f32 %v829_v62, %v2204_v63 }
  0xf0   : > { %v577_v19 = vpop.f32.mrf.mxu0 }
  0xf1   : > { %v574_v8 = vadd.f32 %v573_v0, %v535_v4  ;;  %v828_v0 = vld [vmem:[#allocation8 + $0x58] sm:$0xff]  ;;  %v902_v4 = vand.u32 4294901760, %v2207_v1 }
  0xf2   : > { %v507_v9 = vpop.f32.mrf.mxu2  ;;  %v606_v24 = vpop.f32.mrf.mxu1  ;;  %v2209_v2 = vand.u32 4294901760, %v828_v0 }
  0xf3   : > { %v603_v11 = vadd.f32 %v602_v3, %v574_v8  ;;  %v508_v15 = vadd.f32 %v507_v9, %v473_v10  ;;  %v827_v3 = vld [vmem:[#allocation8 + $0x50] sm:$0xff]  ;;  %v826_v8 = vld [vmem:[#allocation8 + $0x48] sm:$0xff]  ;;  %v903_v9 = vsub.f32 %v2207_v1, %v902_v4 }
  0xf4   : > { %v2215_v6 = vsub.f32 %v828_v0, %v2209_v2  ;;  %v2217_v7 = vand.u32 4294901760, %v827_v3  ;;  %v2229_v13 = vand.u32 4294901760, %v826_v8  ;;  %v820_v0 = vld [vmem:[#allocation8 + $0x18] sm:$0xff] }
  0xf5   : > { %v2124_v16 = vmul.f32 %v603_v11, %v2121_v14 }
  0xf6   : > { %v540_v17 = vpop.f32.mrf.mxu3  ;;  %v908_v10 = vand.u32 4294901760, %v2215_v6  ;;  %v2227_v11 = vsub.f32 %v827_v3, %v2217_v7  ;;  %v2239_v22 = vsub.f32 %v826_v8, %v2229_v13 }
  0xf7   : > { %v541_v20 = vadd.f32 %v540_v17, %v508_v15  ;;  %v633_v23 = vand.u32 4294901760, %v2124_v16  ;;  %v825_v15 = vld [vmem:[#allocation8 + $0x40] sm:$0xff]  ;;  %v904_v17 = vand.u32 4294901760, %v903_v9 }
  0xf8   : > { %v920_v30 = vand.u32 4294901760, %v2239_v22 }
  0xf9   : > { %v578_v26 = vadd.f32 %v577_v19, %v541_v20  ;;  %v673_v31 = vsub.f32 %v2124_v16, %v633_v23  ;;  %v909_v19 = vsub.f32 %v2215_v6, %v908_v10  ;;  %v914_v20 = vand.u32 4294901760, %v2227_v11 }
  0xfb   : > { %v607_v27 = vadd.f32 %v606_v24, %v578_v26  ;;  %v674_v35 = vand.u32 4294901760, %v673_v31  ;;  %v824_v24 = vld [vmem:[#allocation8 + $0x38] sm:$0xff]  ;;  %v910_v26 = vand.u32 4294901760, %v909_v19  ;;  %v819_v19 = vld [vmem:[#allocation8 + $0x10] sm:$0xff] }
  0xfd   : > { %v2143_v32 = vmul.f32 %v607_v27, %v2137_v29  ;;  %v675_v38 = vsub.f32 %v673_v31, %v674_v35  ;;  %v915_v27 = vsub.f32 %v2227_v11, %v914_v20 }
  0xff   : > { %v631_v33 = vand.u32 4294901760, %v2143_v32  ;;  %v676_v52 = vand.u32 4294901760, %v675_v38 }
 0x101   : > { %v667_v18 = vsub.f32 %v2143_v32, %v631_v33  ;;  %632 = vmatpush.msra.mxu2 %v631_v33  ;;  %733 = vmatpush.msra.mxu1 %v631_v33 }
 0x103   : > { %634 = vmatpush.msra.mxu2 %v633_v23  ;;  %703 = vmatpush.msra.mxu0 %v667_v18  ;;  %v668_v37 = vand.u32 4294901760, %v667_v18 }
 0x104   : > { %735 = vmatpush.msra.mxu1 %v633_v23  ;;  %640 = vmatmul.f32.vlgmr.msra.gmra.mxu2 %v2146_v34 }
 0x105   : > { %706 = vmatpush.msra.mxu0 %v673_v31  ;;  %766 = vmatpush.msrb.mxu2 %v668_v37  ;;  %v669_v43 = vsub.f32 %v667_v18, %v668_v37  ;;  %v2250_v31 = vand.u32 4294901760, %v824_v24  ;;  %v916_v18 = vand.u32 4294901760, %v915_v27  ;;  %v921_v37 = vsub.f32 %v2239_v22, %v920_v30 }
 0x106   : > { %709 = vmatmul.f32.vlgmr.msra.gmra.mxu0 %v2119_v12  ;;  %739 = vmatmul.f32.vlgmr.msra.gmra.mxu1 %v2131_v25 }
 0x107   : > { %770 = vmatpush.msrb.mxu2 %v674_v35  ;;  %v670_v47 = vand.u32 4294901760, %v669_v43  ;;  %834 = vmatpush.msrb.mxu0 %v2155_v44  ;;  %v823_v35 = vld [vmem:[#allocation8 + $0x30] sm:$0xff]  ;;  %v2262_v38 = vsub.f32 %v824_v24, %v2250_v31  ;;  %v922_v42 = vand.u32 4294901760, %v921_v37  ;;  %v818_v37 = vld [vmem:[#allocation8 + $0x8] sm:$0xff] }
 0x108   : > { %887 = vmatpush.msrb.mxu1 %v886_v59  ;;  %v2264_v39 = vand.u32 4294901760, %v823_v35 }
 0x109   : > { %671 = vmatpush.msra.mxu3 %v670_v47  ;;  %836 = vmatpush.msrb.mxu0 %v2157_v45  ;;  %v932_v43 = vand.u32 4294901760, %v2262_v38 }
 0x10a   : > { %989 = vmatpush.msra.mxu2 %v2164_v48  ;;  %893 = vmatpush.msrb.mxu1 %v892_v60  ;;  %v2271_v47 = vsub.f32 %v823_v35, %v2264_v39  ;;  %v2308_v35 = vand.u32 4294901760, %v819_v19 }
 0x10b   : > { %677 = vmatpush.msra.mxu3 %v676_v52  ;;  %838 = vmatpush.msrb.mxu0 %v2159_v46  ;;  %v2273_v52 = vand.u32 4294901760, %v822_v41  ;;  %v933_v58 = vsub.f32 %v2262_v38, %v932_v43 }
 0x10c   : > { %648 = vmatmul.f32.gmra.mxu2 %v2173_v51  ;;  %679 = vmatmul.f32.vlgmr.msra.gmra.mxu3 %v2115_v5  ;;  %v2466_v59 = vand.u32 4294901760, %v2271_v47 }
 0x10d   : > { %795 = vmatpush.msrb.mxu3 %v631_v33  ;;  %992 = vmatpush.msra.mxu2 %v2167_v49  ;;  %v2286_v60 = vsub.f32 %v822_v41, %v2273_v52  ;;  %v934_v3 = vand.u32 4294901760, %v933_v58 }
 0x10e   : > { %714 = vmatmul.f32.gmra.mxu0 %v2135_v28  ;;  %745 = vmatmul.f32.gmra.mxu1 %v2149_v36  ;;  %v939_v8 = vsub.f32 %v2271_v47, %v2466_v59 }
 0x10f   : > { %797 = vmatpush.msrb.mxu3 %v633_v23  ;;  %995 = vmatpush.msra.mxu2 %v2170_v50  ;;  %v2243_v23 = vand.u32 4294901760, %v825_v15  ;;  %v2465_v9 = vand.u32 4294901760, %v2286_v60 }
 0x110   : > { %899 = vmatpush.msrb.mxu1 %v898_v61  ;;  %840 = vmatpush.msrb.mxu0 %v2204_v63  ;;  %v2288_v61 = vand.u32 4294901760, %v821_v57  ;;  %v940_v24 = vand.u32 4294901760, %v939_v8 }
 0x111   : > { %1047 = vmatpush.msra.mxu3 %v2155_v44  ;;  %998 = vmatpush.msra.mxu2 %v2207_v1  ;;  %v2254_v33 = vsub.f32 %v825_v15, %v2243_v23 }
 0x112   : > { %842 = vmatpush.msrb.mxu0 %v2209_v2  ;;  %905 = vmatpush.msrb.mxu1 %v904_v17  ;;  %v2298_v15 = vsub.f32 %v821_v57, %v2288_v61  ;;  %v2301_v17 = vand.u32 4294901760, %v820_v0  ;;  %v2322_v57 = vand.u32 4294901760, %v818_v37 }
 0x113   : > { %1049 = vmatpush.msra.mxu3 %v2157_v45  ;;  %1001 = vmatpush.msra.mxu2 %v2215_v6  ;;  %v926_v40 = vand.u32 4294901760, %v2254_v33 }
 0x114   : > { %683 = vmatmul.f32.gmra.mxu3 %v2127_v21  ;;  %772 = vmatmul.f32.vlgmr.msrb.gmra.mxu2 %v2115_v5  ;;  %v2464_v27 = vand.u32 4294901760, %v2298_v15  ;;  %v967_v8 = vsub.f32 %v818_v37, %v2322_v57  ;;  %v2484_v50 = vand.u32 4294901760, %v2298_v15 }
 0x115   : > { %1051 = vmatpush.msra.mxu3 %v2159_v46  ;;  %844 = vmatpush.msrb.mxu0 %v2217_v7  ;;  %v927_v56 = vsub.f32 %v2254_v33, %v926_v40 }
 0x116   : > { %1004 = vmatpush.msra.mxu2 %v2227_v11  ;;  %911 = vmatpush.msrb.mxu1 %v910_v26  ;;  %v945_v26 = vsub.f32 %v2286_v60, %v2465_v9 }
 0x117   : > { %1053 = vmatpush.msra.mxu3 %v2204_v63  ;;  %846 = vmatpush.msrb.mxu0 %v2229_v13  ;;  %v928_v62 = vand.u32 4294901760, %v927_v56  ;;  %v2320_v56 = vsub.f32 %v819_v19, %v2308_v35 }
 0x118   : > { %1007 = vmatpush.msra.mxu2 %v2239_v22  ;;  %917 = vmatpush.msrb.mxu1 %v916_v18  ;;  %v2313_v18 = vsub.f32 %v820_v0, %v2301_v17  ;;  %v946_v41 = vand.u32 4294901760, %v945_v26 }
 0x119   : > { %1055 = vmatpush.msra.mxu3 %v2209_v2  ;;  %848 = vmatpush.msrb.mxu0 %v2243_v23 }
 0x11a   : > { %1010 = vmatpush.msra.mxu2 %v2254_v33  ;;  %923 = vmatpush.msrb.mxu1 %v922_v42  ;;  %v951_v42 = vsub.f32 %v2298_v15, %v2464_v27  ;;  %v956_v58 = vand.u32 4294901760, %v2313_v18  ;;  %v968_v27 = vand.u32 4294901760, %v967_v8 }
 0x11b   : > { %1057 = vmatpush.msra.mxu3 %v2217_v7  ;;  %850 = vmatpush.msrb.mxu0 %v2250_v31 }
 0x11c   : > { %776 = vmatmul.f32.gmra.mxu2 %v2127_v21  ;;  %799 = vmatmul.f32.vlgmr.msrb.gmra.mxu3 %v2115_v5  ;;  %v952_v0 = vand.u32 4294901760, %v951_v42  ;;  %v957_v19 = vsub.f32 %v2313_v18, %v956_v58  ;;  %v969_v59 = vsub.f32 %v967_v8, %v968_v27 }
 0x11d   : > { %1059 = vmatpush.msra.mxu3 %v2229_v13  ;;  %852 = vmatpush.msrb.mxu0 %v2264_v39 }
 0x11e   : > { %1013 = vmatpush.msra.mxu2 %v2262_v38  ;;  %929 = vmatpush.msrb.mxu1 %v928_v62  ;;  %v817_v62 = vld [vmem:[#allocation8] sm:$0xff]  ;;  %v958_v37 = vand.u32 4294901760, %v957_v19 }
 0x11f   : > { %1061 = vmatpush.msra.mxu3 %v2243_v23  ;;  %854 = vmatpush.msrb.mxu0 %v2273_v52  ;;  %v2330_v26 = vand.u32 4294901760, %v817_v62 }
 0x120   : > { %1016 = vmatpush.msra.mxu2 %v2271_v47  ;;  %935 = vmatpush.msrb.mxu1 %v934_v3  ;;  %v962_v3 = vand.u32 4294901760, %v2320_v56 }
 0x121   : > { %1063 = vmatpush.msra.mxu3 %v2250_v31  ;;  %856 = vmatpush.msrb.mxu0 %v2288_v61  ;;  %v973_v42 = vsub.f32 %v817_v62, %v2330_v26 }
 0x122   : > { %1019 = vmatpush.msra.mxu2 %v2286_v60  ;;  %941 = vmatpush.msrb.mxu1 %v940_v24  ;;  %v963_v24 = vsub.f32 %v2320_v56, %v962_v3 }
 0x123   : > { %1065 = vmatpush.msra.mxu3 %v2264_v39  ;;  %858 = vmatpush.msrb.mxu0 %v2301_v17 }
 0x124   : > { %803 = vmatmul.f32.gmra.mxu3 %v2127_v21  ;;  %1022 = vmatpush.msra.mxu2 %v2298_v15  ;;  %v964_v9 = vand.u32 4294901760, %v963_v24 }
 0x125   : > { %1067 = vmatpush.msra.mxu3 %v2273_v52  ;;  %860 = vmatpush.msrb.mxu0 %v2308_v35 }
 0x126   : > { %1025 = vmatpush.msra.mxu2 %v2313_v18  ;;  %947 = vmatpush.msrb.mxu1 %v946_v41  ;;  %v974_v41 = vand.u32 4294901760, %v973_v42  ;;  %v970_v18 = vand.u32 4294901760, %v969_v59 }
 0x127   : > { %1069 = vmatpush.msra.mxu3 %v2288_v61  ;;  %862 = vmatpush.msrb.mxu0 %v2322_v57 }
 0x128   : > { %1028 = vmatpush.msra.mxu2 %v2320_v56  ;;  %953 = vmatpush.msrb.mxu1 %v952_v0  ;;  %v975_v62 = vsub.f32 %v973_v42, %v974_v41 }
 0x129   : > { %1071 = vmatpush.msra.mxu3 %v2301_v17  ;;  %864 = vmatpush.msrb.mxu0 %v2330_v26 }
 0x12a   : > { %1031 = vmatpush.msra.mxu2 %v967_v8  ;;  %959 = vmatpush.msrb.mxu1 %v958_v37  ;;  %v976_v56 = vand.u32 4294901760, %v975_v62 }
 0x12b   : > { %1073 = vmatpush.msra.mxu3 %v2308_v35  ;;  %1094 = vmatpush.msra.mxu0 %v884_v53 }
 0x12c   : > { %1034 = vmatpush.msra.mxu2 %v973_v42  ;;  %965 = vmatpush.msrb.mxu1 %v964_v9 }
 0x12d   : > { %1075 = vmatpush.msra.mxu3 %v2322_v57  ;;  %1098 = vmatpush.msra.mxu0 %v890_v54 }
 0x12e   : > { %971 = vmatpush.msrb.mxu1 %v970_v18 }
 0x12f   : > { %1077 = vmatpush.msra.mxu3 %v2330_v26  ;;  %1102 = vmatpush.msra.mxu0 %v896_v55 }
 0x130   : > { %977 = vmatpush.msrb.mxu1 %v976_v56 }
 0x131   : > { %1106 = vmatpush.msra.mxu0 %v902_v4 }
 0x132   : > { %1165 = vmatpush.msra.mxu1 %v2155_v44  ;;  %v2482_v44 = vand.u32 4294901760, %v2271_v47 }
 0x133   : > { %1110 = vmatpush.msra.mxu0 %v908_v10 }
 0x134   : > { %1167 = vmatpush.msra.mxu1 %v2157_v45  ;;  %v2483_v45 = vand.u32 4294901760, %v2286_v60 }
 0x135   : > { %1114 = vmatpush.msra.mxu0 %v914_v20 }
 0x136   : > { %1169 = vmatpush.msra.mxu1 %v2159_v46 }
 0x137   : > { %1118 = vmatpush.msra.mxu0 %v920_v30 }
 0x138   : > { %1171 = vmatpush.msra.mxu1 %v2204_v63 }
 0x139   : > { %1122 = vmatpush.msra.mxu0 %v926_v40 }
 0x13a   : > { %1173 = vmatpush.msra.mxu1 %v2209_v2 }
 0x13b   : > { %1126 = vmatpush.msra.mxu0 %v932_v43 }
 0x13c   : > { %1175 = vmatpush.msra.mxu1 %v2217_v7 }
 0x13d   : > { %1130 = vmatpush.msra.mxu0 %v2482_v44 }
 0x13e   : > { %1177 = vmatpush.msra.mxu1 %v2229_v13 }
 0x13f   : > { %1134 = vmatpush.msra.mxu0 %v2483_v45 }
 0x140   : > { %1179 = vmatpush.msra.mxu1 %v2243_v23  ;;  %v1651_v23 = vld [vmem:[%s2455_s3] ss:$0 sm:$0xff] }
 0x141   : > { %1138 = vmatpush.msra.mxu0 %v2484_v50 }
 0x142   : > { %1181 = vmatpush.msra.mxu1 %v2250_v31 }
 0x143   : > { %1142 = vmatpush.msra.mxu0 %v956_v58 }
 0x144   : > { %1183 = vmatpush.msra.mxu1 %v2264_v39 }
 0x145   : > { %1146 = vmatpush.msra.mxu0 %v962_v3 }
 0x146   : > { %1185 = vmatpush.msra.mxu1 %v2273_v52 }
 0x147   : > { %1150 = vmatpush.msra.mxu0 %v968_v27 }
 0x148   : > { %1187 = vmatpush.msra.mxu1 %v2288_v61 }
 0x149   : > { %1154 = vmatpush.msra.mxu0 %v974_v41 }
 0x14a   : > { %1189 = vmatpush.msra.mxu1 %v2301_v17 }
 0x14c   : > { %1191 = vmatpush.msra.mxu1 %v2308_v35 }
 0x14e   : > { %1193 = vmatpush.msra.mxu1 %v2322_v57 }
 0x150   : > { %1195 = vmatpush.msra.mxu1 %v2330_v26 }
 0x183   : > { %v710_v54 = vpop.f32.mrf.mxu0  ;;  %v740_v63 = vpop.f32.mrf.mxu1 }
 0x187   : > { %v641_v48 = vpop.f32.mrf.mxu2 }
 0x188   : > { %v642_v53 = vadd.f32 %v641_v48, %v2124_v16 }
 0x18b   : > { %v715_v10 = vpop.f32.mrf.mxu0 }
 0x18f   : > { %v649_v46 = vpop.f32.mrf.mxu2  ;;  %v680_v49 = vpop.f32.mrf.mxu3 }
 0x190   : > { %v681_v55 = vadd.f32 %v680_v49, %v642_v53  ;;  %v650_v16 = vadd.f32 %v649_v46, %v2143_v32  ;;  %v746_v32 = vpop.f32.mrf.mxu1 }
 0x192   : > { %v711_v2 = vadd.f32 %v710_v54, %v681_v55 }
 0x194   : > { %v741_v6 = vadd.f32 %v740_v63, %v711_v2 }
 0x197   : > { %v684_v1 = vpop.f32.mrf.mxu3  ;;  %v773_v4 = vpop.f32.mrf.mxu2 }
 0x198   : > { %v685_v7 = vadd.f32 %v684_v1, %v650_v16  ;;  %v774_v11 = vadd.f32 %v773_v4, %v741_v6 }
 0x19a   : > { %v716_v20 = vadd.f32 %v715_v10, %v685_v7 }
 0x19c   : > { %v747_v33 = vadd.f32 %v746_v32, %v716_v20 }
 0x19f   : > { %v800_v13 = vpop.f32.mrf.mxu3  ;;  %v777_v31 = vpop.f32.mrf.mxu2 }
 0x1a0   : > { %v801_v22 = vadd.f32 %v800_v13, %v774_v11  ;;  %v778_v39 = vadd.f32 %v777_v31, %v747_v33 }
 0x1a2   : > { %v807_v30 = vmul.f32 %v801_v22, %v2121_v14 }
 0x1a4   : > { %v813_v38 = vadd.f32 %v1651_v23, %v807_v30 }
 0x1a6   : > { %1657 = vtanh.f32 %v813_v38 }
 0x1a7   : > { %v804_v40 = vpop.f32.mrf.mxu3 }
 0x1a8   : > { %v805_v43 = vadd.f32 %v804_v40, %v778_v39 }
 0x1aa   : > { %v808_v47 = vmul.f32 %v805_v43, %v2137_v29 }
 0x1ac   : > { %v2389_v52 = vpop.eup %1657  ;;  %v814_v59 = vadd.f32 %v1651_v23, %v808_v47 }
 0x1ad   : > { %v865_v60 = vand.u32 4294901760, %v2389_v52 }
 0x1ae   : > { %1659 = vtanh.f32 %v814_v59 }
 0x1af   : > { %979 = vmatmul.f32.vlgmr.msrb.gmra.mxu1 %v865_v60  ;;  %v866_v61 = vsub.f32 %v2389_v52, %v865_v60 }
 0x1b1   : > { %1037 = vmatmul.f32.vlgmr.msra.gmra.mxu2 %v866_v61  ;;  %v867_v9 = vand.u32 4294901760, %v866_v61 }
 0x1b3   : > { %1081 = vmatmul.f32.vlgmr.msra.gmra.mxu3 %v867_v9  ;;  %v868_v15 = vsub.f32 %v866_v61, %v867_v9 }
 0x1b4   : > { %v2393_v17 = vpop.eup %1659 }
 0x1b5   : > { %v869_v27 = vand.u32 4294901760, %v868_v15  ;;  %v873_v35 = vand.u32 4294901760, %v2393_v17 }
 0x1b7   : > { %870 = vmatmul.f32.vlgmr.msrb.gmra.mxu0 %v869_v27  ;;  %983 = vmatmul.f32.gmra.mxu1 %v873_v35  ;;  %v874_v57 = vsub.f32 %v2393_v17, %v873_v35 }
 0x1b9   : > { %1042 = vmatmul.f32.gmra.mxu2 %v874_v57  ;;  %v875_v58 = vand.u32 4294901760, %v874_v57 }
 0x1bb   : > { %1087 = vmatmul.f32.gmra.mxu3 %v875_v58  ;;  %v876_v0 = vsub.f32 %v874_v57, %v875_v58 }
 0x1bd   : > { %v877_v3 = vand.u32 4294901760, %v876_v0 }
 0x1bf   : > { %878 = vmatmul.f32.gmra.mxu0 %v877_v3  ;;  %1197 = vmatmul.f32.vlgmr.msra.gmra.mxu1 %v865_v60 }
 0x1c7   : > { %1156 = vmatmul.f32.vlgmr.msra.gmra.mxu0 %v865_v60  ;;  %1201 = vmatmul.f32.gmra.mxu1 %v873_v35 }
 0x1cf   : > { %1160 = vmatmul.f32.gmra.mxu0 %v873_v35 }
 0x22c   : > { %v980_v8 = vpop.f32.mrf.mxu1 }
 0x234   : > { %v871_v26 = vpop.f32.mrf.mxu0  ;;  %v984_v19 = vpop.f32.mrf.mxu1 }
 0x235   : > { %v981_v24 = vadd.f32 %v980_v8, %v871_v26  ;;  %v1038_v42 = vpop.f32.mrf.mxu2 }
 0x236   : > { %v1082_v18 = vpop.f32.mrf.mxu3 }
 0x237   : > { %v1039_v41 = vadd.f32 %v1038_v42, %v981_v24 }
 0x239   : > { %v1083_v62 = vadd.f32 %v1082_v18, %v1039_v41 }
 0x23c   : > { %v879_v37 = vpop.f32.mrf.mxu0  ;;  %v1198_v48 = vpop.f32.mrf.mxu1 }
 0x23d   : > { %v985_v56 = vadd.f32 %v984_v19, %v879_v37  ;;  %v1043_v46 = vpop.f32.mrf.mxu2 }
 0x23e   : > { %v1088_v54 = vpop.f32.mrf.mxu3 }
 0x23f   : > { %v1044_v49 = vadd.f32 %v1043_v46, %v985_v56 }
 0x241   : > { %v1089_v55 = vadd.f32 %v1088_v54, %v1044_v49 }
 0x244   : > { %v1157_v44 = vpop.f32.mrf.mxu0  ;;  %v1202_v4 = vpop.f32.mrf.mxu1 }
 0x245   : > { %v1158_v45 = vadd.f32 %v1157_v44, %v1083_v62 }
 0x247   : > { %v1199_v50 = vadd.f32 %v1198_v48, %v1158_v45 }
 0x249   : > { %v1205_v53 = vmul.f32 %v1199_v50, %v2121_v14 }
 0x24b   : > { %v1223_v2 = vand.u32 4294901760, %v1205_v53 }
 0x24c   : > { %v1161_v63 = vpop.f32.mrf.mxu0 }
 0x24d   : > { %v1162_v1 = vadd.f32 %v1161_v63, %v1089_v55  ;;  %v1263_v7 = vsub.f32 %v1205_v53, %v1223_v2 }
 0x24f   : > { %v1203_v16 = vadd.f32 %v1202_v4, %v1162_v1  ;;  %v1264_v13 = vand.u32 4294901760, %v1263_v7 }
 0x251   : > { %v1206_v6 = vmul.f32 %v1203_v16, %v2137_v29  ;;  %v1265_v23 = vsub.f32 %v1263_v7, %v1264_v13 }
 0x253   : > { %v1221_v10 = vand.u32 4294901760, %v1206_v6  ;;  %v1266_v30 = vand.u32 4294901760, %v1265_v23 }
 0x255   : > { %1222 = vmatpush.msrb.mxu2 %v1221_v10  ;;  %1385 = vmatpush.msrb.mxu1 %v1221_v10  ;;  %v1257_v11 = vsub.f32 %v1206_v6, %v1221_v10 }
 0x257   : > { %1224 = vmatpush.msrb.mxu2 %v1223_v2  ;;  %1387 = vmatpush.msrb.mxu1 %v1223_v2  ;;  %v1258_v20 = vand.u32 4294901760, %v1257_v11 }
 0x258   : > { %1230 = vmatmul.f32.vlgmr.msrb.gmra.mxu2 %v2146_v34  ;;  %1389 = vmatmul.f32.vlgmr.msrb.gmra.mxu1 %v2115_v5 }
 0x259   : > { %1293 = vmatpush.msra.mxu2 %v1257_v11  ;;  %1356 = vmatpush.msrb.mxu0 %v1258_v20  ;;  %v1259_v22 = vsub.f32 %v1257_v11, %v1258_v20 }
 0x25b   : > { %1296 = vmatpush.msra.mxu2 %v1263_v7  ;;  %1360 = vmatpush.msrb.mxu0 %v1264_v13  ;;  %v1260_v32 = vand.u32 4294901760, %v1259_v22 }
 0x25c   : > { %1362 = vmatmul.f32.vlgmr.msrb.gmra.mxu0 %v2115_v5 }
 0x25d   : > { %1261 = vmatpush.msrb.mxu3 %v1260_v32 }
 0x25f   : > { %1267 = vmatpush.msrb.mxu3 %v1266_v30 }
 0x260   : > { %1238 = vmatmul.f32.gmra.mxu2 %v2173_v51  ;;  %1269 = vmatmul.f32.vlgmr.msrb.gmra.mxu3 %v2115_v5 }
 0x261   : > { %1323 = vmatpush.msra.mxu3 %v1221_v10  ;;  %1393 = vmatmul.f32.gmra.mxu1 %v2127_v21 }
 0x263   : > { %1325 = vmatpush.msra.mxu3 %v1223_v2 }
 0x264   : > { %1366 = vmatmul.f32.gmra.mxu0 %v2127_v21 }
 0x268   : > { %1273 = vmatmul.f32.gmra.mxu3 %v2127_v21  ;;  %1299 = vmatmul.f32.vlgmr.msra.gmra.mxu2 %v2119_v12 }
 0x270   : > { %1304 = vmatmul.f32.gmra.mxu2 %v2135_v28  ;;  %1329 = vmatmul.f32.vlgmr.msra.gmra.mxu3 %v2131_v25 }
 0x278   : > { %1335 = vmatmul.f32.gmra.mxu3 %v2149_v36  ;;  %v1652_v36 = vld [vmem:[%s2457_s5] ss:$0 sm:$0xff] }
 0x2d5   : > { %v1390_v59 = vpop.f32.mrf.mxu1 }
 0x2d9   : > { %v1363_v40 = vpop.f32.mrf.mxu0 }
 0x2db   : > { %v1231_v34 = vpop.f32.mrf.mxu2 }
 0x2dc   : > { %v1232_v38 = vadd.f32 %v1231_v34, %v1205_v53 }
 0x2de   : > { %v1394_v0 = vpop.f32.mrf.mxu1 }
 0x2e1   : > { %v1367_v35 = vpop.f32.mrf.mxu0 }
 0x2e3   : > { %v1239_v51 = vpop.f32.mrf.mxu2  ;;  %v1270_v31 = vpop.f32.mrf.mxu3 }
 0x2e4   : > { %v1271_v39 = vadd.f32 %v1270_v31, %v1232_v38  ;;  %v1240_v60 = vadd.f32 %v1239_v51, %v1206_v6 }
 0x2eb   : > { %v1274_v5 = vpop.f32.mrf.mxu3  ;;  %v1300_v33 = vpop.f32.mrf.mxu2 }
 0x2ec   : > { %v1301_v43 = vadd.f32 %v1300_v33, %v1271_v39  ;;  %v1275_v61 = vadd.f32 %v1274_v5, %v1240_v60 }
 0x2f3   : > { %v1330_v47 = vpop.f32.mrf.mxu3  ;;  %v1305_v28 = vpop.f32.mrf.mxu2 }
 0x2f4   : > { %v1331_v21 = vadd.f32 %v1330_v47, %v1301_v43  ;;  %v1306_v9 = vadd.f32 %v1305_v28, %v1275_v61 }
 0x2f6   : > { %v1364_v12 = vadd.f32 %v1363_v40, %v1331_v21 }
 0x2f8   : > { %v1391_v25 = vadd.f32 %v1390_v59, %v1364_v12 }
 0x2fa   : > { %v1397_v15 = vmul.f32 %v1391_v25, %v2121_v14 }
 0x2fb   : > { %v1336_v27 = vpop.f32.mrf.mxu3 }
 0x2fc   : > { %v1403_v57 = vadd.f32 %v1652_v36, %v1397_v15  ;;  %v1337_v58 = vadd.f32 %v1336_v27, %v1306_v9 }
 0x2fe   : > { %1661 = vtanh.f32 %v1403_v57  ;;  %v1368_v3 = vadd.f32 %v1367_v35, %v1337_v58 }
 0x300   : > { %v1395_v8 = vadd.f32 %v1394_v0, %v1368_v3 }
 0x302   : > { %v1398_v26 = vmul.f32 %v1395_v8, %v2137_v29 }
 0x304   : > { %v1662_v19 = vpop.eup %1661  ;;  %v1404_v24 = vadd.f32 %v1652_v36, %v1398_v26 }
 0x305   : > { %v1407_v42 = vadd.f32 %v1662_v19, %v2389_v52 }
 0x306   : > { %1663 = vtanh.f32 %v1404_v24 }
 0x307   : > { %1409 = vst [vmem:[%s346_s29] sm:$0xff] %v1407_v42 }
 0x30c   : > { %v1664_v14 = vpop.eup %1663 }
 0x30d   : > { %v1408_v29 = vadd.f32 %v1664_v14, %v2393_v17 }
 0x30f   : > { %1410 = vst [vmem:[%s346_s29 + $0x8] sm:$0xff] %v1408_v29 }
 0x310   : > { %1812 = shalt.err (!%p1809_p11)
}
 0x311   : > { %s1869_s7 = smov 128   ;;  %s1870_s17 = smov 8  }
 0x312   : > { %1587 = dma.vmem_to_hbm [thread:$0]  (%p1978_p3), %s1425_s10, 256, %s1427_s13, %s1412_s25, %s1869_s7, %s1869_s7, %s1870_s17  }
 0x313 PF: > { %s1441_s27 = sand.u32 1, %s1851_s21   ;;  %p2485_p12 = scmp.ge.s32.totalorder %s1863_s24, 2 }
 0x314   : > { %s1442_s20 = scalar_lea.sflag [#allocation4], %s1441_s27 }
 0x315   : > { %p1604_p13 = pnand %p2485_p12, %p1941_p6 }
 0x317   : > { %p1605_p0 = pneg %p1604_p13 }
 0x319   : > { %1846 = dma.done.wait (%p1605_p0), %s1442_s20, 256  }
 0x31a   : > { %1848 = vsyncadd (%p1605_p0), %s1442_s20, 4294967040  ;;  %s2486_s15 = sld [smem:[#allocation16_spill]]  ;;  %p23_p5 = scmp.ge.s32.totalorder %s1968_s18, 4  }
 0x31b   : > { %s2487_s23 = sld [smem:[#allocation17_spill]]  ;;  %s2488_s21 = smov %s1855_s22 }
 0x31c   : > { %s2490_s24 = smov %s1968_s18  ;;  %25 = sbr.rel (!%p23_p5) target bundleno = 12 (0xc), region = 110 }
 0x320   : > { %s2489_s22 = smov %s2486_s15 }
 0x321   :  { %1448 = vsyncpa [#allocation3], 1 }
 0x322   :  { %1450 = vsyncpa [#allocation3 + $0x1], 1 }
 0x323   :  { %1451 = vsyncpa [#allocation6], 1 }
 0x324   :  { %1453 = vsyncpa [#allocation6 + $0x1], 1 }
 0x325   :  { %1454 = vsyncpa [#allocation9], 1 }
 0x326   :  { %1455 = vsyncpa [#allocation4], 1 }
 0x327   :  { %1457 = vsyncpa [#allocation4 + $0x1], 1 }

</bundles_post_ra>
